<compile_context>
chip_gen: v6e
topology: v6e:2x2x1
jax: 0.10.0
libtpu: 0.0.40
codegen_flags: <defaults>
</compile_context>

<pallas_src>
import functools

import numpy as np
import jax
import jax.numpy as jnp
from jax.experimental import pallas as pl
from jax.experimental.pallas import tpu as pltpu


def _round_up(x, m):
    return ((x + m - 1) // m) * m


# ----------------------------- kernel ----------------------------------------

def _pnn_kernel(z_ref, wz_ref, ra_ref, rb_ref, wp_ref, b_ref, out_ref):
    # z_ref : (TB, F*E)        activations (one batch tile)
    # wz_ref: (F*E, H_pad)     linear_z weight (transposed, lane-padded)
    # ra_ref: (F*E, P_pad)     0/1 selector -> left factor of pairwise products
    # rb_ref: (F*E, P_pad)     0/1 selector -> right factor
    # wp_ref: (P_pad, H_pad)   expanded linear_p weight
    # b_ref : (1, H_pad)       bz + bp + l_b (lane-padded)
    z = z_ref[...]

    acc = jnp.dot(z, wz_ref[...], preferred_element_type=jnp.float32)
    acc = acc + b_ref[...]

    pa = jnp.dot(z, ra_ref[...], preferred_element_type=jnp.float32)
    pb = jnp.dot(z, rb_ref[...], preferred_element_type=jnp.float32)
    prod = (pa * pb).astype(wp_ref.dtype)                 # one VPU mul, lane-dense

    acc = acc + jnp.dot(prod, wp_ref[...], preferred_element_type=jnp.float32)

    out_ref[...] = acc.astype(out_ref.dtype)


# ----------------------------- host-side prep (once at init) -----------------

def prepare_params(params, mode, F, E, dtype=jnp.float32):
    """Build the selector matrices and the padded / transposed weights once.

    params: torch-layout tensors
        wz (H, F*E), bz (H,), wp (H, p_in), bp (H,), lb (H,)
        p_in = F*F (inner) or E*E (outer)
    """
    H = int(params["bz"].shape[-1])
    H_pad = _round_up(H, 128)                  # lane-dense output
    FE = F * E
    P = F * F * E if mode == "inner" else E * E
    P_pad = _round_up(P, 128)                  # lane-dense pairwise intermediate

    wz_np = np.zeros((FE, H_pad), np.float32)
    wz_np[:, :H] = np.asarray(params["wz"], np.float32).T

    bias_np = np.zeros((1, H_pad), np.float32)
    bias_np[0, :H] = np.asarray(params["bz"], np.float32) \
        + np.asarray(params["bp"], np.float32) \
        + np.asarray(params["lb"], np.float32)

    ra = np.zeros((FE, P_pad), np.float32)
    rb = np.zeros((FE, P_pad), np.float32)
    wp_exp = np.zeros((P_pad, H_pad), np.float32)
    wp_t = np.asarray(params["wp"], np.float32).T          # (p_in, H)

    if mode == "inner":
        # prod[:, (f*F+g)*E + e] = z[:, f*E+e] * z[:, g*E+e]
        # wp_exp[(f*F+g)*E + e, :] = Wp[:, f*F+g]  (e-reduction folded into MXU)
        for f in range(F):
            for g in range(F):
                base = (f * F + g) * E
                for e in range(E):
                    ra[f * E + e, base + e] = 1.0
                    rb[g * E + e, base + e] = 1.0
                wp_exp[base:base + E, :H] = wp_t[f * F + g]
    else:
        # s_i = sum_f z[:, f*E+i];  prod[:, i*E+j] = s_i * s_j
        for i in range(E):
            for j in range(E):
                col = i * E + j
                for f in range(F):
                    ra[f * E + i, col] = 1.0
                    rb[f * E + j, col] = 1.0
                wp_exp[col, :H] = wp_t[col]

    return {
        "wz": jnp.asarray(wz_np, dtype),
        "ra": jnp.asarray(ra, dtype),
        "rb": jnp.asarray(rb, dtype),
        "wp": jnp.asarray(wp_exp, dtype),
        "b": jnp.asarray(bias_np, jnp.float32),
        "H": H,
        "H_pad": H_pad,
    }


# ----------------------------- forward wrapper --------------------------------

def product_layer_forward(sparse_embeds, prepped):
    F = len(sparse_embeds)
    B, E = sparse_embeds[0].shape
    H, H_pad = prepped["H"], prepped["H_pad"]
    dtype = prepped["wz"].dtype
    FE = F * E
    P_pad = prepped["ra"].shape[1]

    # Single activation stream (== torch.cat(sparse_embeds, dim=1)).
    # TODO(synk): have the upstream embedding gather emit this layout directly
    # to avoid the concat copy (review item 7).
    z = jnp.concatenate(sparse_embeds, axis=1).astype(dtype)   # (B, F*E)

    # Batch tile: multiple of 8 sublanes, up to 1024 rows (per-tile footprint at
    # 1024 is ~1.5 MB double-buffered — far inside every chip's VMEM).  Cap so
    # the grid has >= 2 tiles when B > 8, keeping both v7x TensorCores busy.
    TB = min(_round_up(B, 8), 1024)
    if B > 8:
        TB = min(TB, _round_up(-(-B // 2), 8))
    B_pad = _round_up(B, TB)
    if B_pad != B:
        z = jnp.pad(z, ((0, B_pad - B), (0, 0)))

    out = pl.pallas_call(
        _pnn_kernel,
        out_shape=jax.ShapeDtypeStruct((B_pad, H_pad), jnp.float32),
        grid_spec=pltpu.PrefetchScalarGridSpec(
            num_scalar_prefetch=0,
            grid=(B_pad // TB,),
            in_specs=[
                pl.BlockSpec((TB, FE), lambda i: (i, 0)),         # activations: tiled
                pl.BlockSpec((FE, H_pad), lambda i: (0, 0)),      # weights: resident
                pl.BlockSpec((FE, P_pad), lambda i: (0, 0)),
                pl.BlockSpec((FE, P_pad), lambda i: (0, 0)),
                pl.BlockSpec((P_pad, H_pad), lambda i: (0, 0)),
                pl.BlockSpec((1, H_pad), lambda i: (0, 0)),       # fused bias
            ],
            out_specs=pl.BlockSpec((TB, H_pad), lambda i: (i, 0)),
        ),
        compiler_params=pltpu.CompilerParams(
            dimension_semantics=("parallel",),
            vmem_limit_bytes=32 * 1024 * 1024,
        ),
    )(z, prepped["wz"], prepped["ra"], prepped["rb"], prepped["wp"], prepped["b"])

    return out[:B, :H]            # drop batch padding + lane padding


# pure-JAX reference (mirrors the PyTorch forward) for a correctness check
def product_layer_reference(sparse_embeds, params, mode):
    e = jnp.stack(sparse_embeds, axis=1)
    z = jnp.concatenate(sparse_embeds, axis=1)
    l_z = z @ params["wz"].T + params["bz"]
    if mode == "inner":
        p = jnp.einsum("bfe,bge->bfg", e, e, preferred_element_type=jnp.float32)
    else:
        s = jnp.sum(e, axis=1)
        p = jnp.einsum("bi,bj->bij", s, s, preferred_element_type=jnp.float32)
    l_p = p.reshape(p.shape[0], -1) @ params["wp"].T + params["bp"]
    return l_z + l_p + params["lb"]


# ----------------------------- main ------------------------------------------

if __name__ == "__main__":
    B = 16           # batch
    F = 4            # number of sparse feature columns
    E = 8            # embed_dim
    H = 32           # hidden_units[0]

    key = jax.random.PRNGKey(0)
    keys = jax.random.split(key, 16)

    sparse_embeds = [jax.random.normal(keys[i], (B, E), dtype=jnp.float32)
                     for i in range(F)]

    for mode_idx, mode in enumerate(["inner", "outer"]):
        p_in = F * F if mode == "inner" else E * E
        kp = jax.random.split(keys[8 + mode_idx], 5)
        params = {
            # nn.Linear(F*E, H)
            "wz": jax.random.normal(kp[0], (H, F * E), dtype=jnp.float32) * 0.1,
            "bz": jax.random.normal(kp[1], (H,), dtype=jnp.float32) * 0.1,
            # nn.Linear(F*F, H) for inner, nn.Linear(E*E, H) for outer
            "wp": jax.random.normal(kp[2], (H, p_in), dtype=jnp.float32) * 0.1,
            "bp": jax.random.normal(kp[3], (H,), dtype=jnp.float32) * 0.1,
            # l_b = torch.rand(H)
            "lb": jax.random.uniform(kp[4], (H,), dtype=jnp.float32),
        }

        prepped = prepare_params(params, mode, F, E)   # done once at init
        out = product_layer_forward(sparse_embeds, prepped)
        out = jax.block_until_ready(out)
        ref = product_layer_reference(sparse_embeds, params, mode)

        assert out.shape == (B, H), out.shape
        assert jnp.allclose(out, ref, atol=1e-3, rtol=1e-3), (
            f"mismatch in mode={mode}: max err "
            f"{jnp.max(jnp.abs(out - ref))}")

    print("KERNEL_OK")
</pallas_src>

<mosaic_0001>
module attributes {stable_mosaic.version = 11 : i64} {
  func.func @_pnn_kernel(%arg0: i32, %arg1: memref<8x32xf32, #tpu.memory_space<vmem>>, %arg2: memref<32x128xf32, #tpu.memory_space<vmem>>, %arg3: memref<32x128xf32, #tpu.memory_space<vmem>>, %arg4: memref<32x128xf32, #tpu.memory_space<vmem>>, %arg5: memref<128x128xf32, #tpu.memory_space<vmem>>, %arg6: memref<1x128xf32, #tpu.memory_space<vmem>>, %arg7: memref<8x128xf32, #tpu.memory_space<vmem>>) attributes {dimension_semantics = [#tpu.dimension_semantics<parallel>], iteration_bounds = array<i64: 2>, scalar_prefetch = 0 : i64, scratch_operands = 0 : i64, tpu.core_type = #tpu.core_type<tc>, window_params = [{transform_indices = @transform_0, window_bounds = array<i64: 8, 32>}, {pipeline_mode = #tpu.pipeline_mode<synchronous>, transform_indices = @transform_1, window_bounds = array<i64: 32, 128>}, {pipeline_mode = #tpu.pipeline_mode<synchronous>, transform_indices = @transform_2, window_bounds = array<i64: 32, 128>}, {pipeline_mode = #tpu.pipeline_mode<synchronous>, transform_indices = @transform_3, window_bounds = array<i64: 32, 128>}, {pipeline_mode = #tpu.pipeline_mode<synchronous>, transform_indices = @transform_4, window_bounds = array<i64: 128, 128>}, {pipeline_mode = #tpu.pipeline_mode<synchronous>, transform_indices = @transform_5, window_bounds = array<i64: 1, 128>}, {transform_indices = @transform_6, window_bounds = array<i64: 8, 128>}]} {
    %c0 = arith.constant 0 : index
    %c0_0 = arith.constant 0 : index
    %0 = vector.load %arg1[%c0, %c0_0] : memref<8x32xf32, #tpu.memory_space<vmem>>, vector<8x32xf32>
    %c0_1 = arith.constant 0 : index
    %c0_2 = arith.constant 0 : index
    %1 = vector.load %arg2[%c0_1, %c0_2] : memref<32x128xf32, #tpu.memory_space<vmem>>, vector<32x128xf32>
    %cst = arith.constant dense<0.000000e+00> : vector<8x128xf32>
    %2 = tpu.matmul %0, %1, %cst {dimension_numbers = #tpu.dot_dimension_numbers<[1], [0], [0], [1], [0, 0, 1, 1], [], []>} : vector<8x32xf32>, vector<32x128xf32>, vector<8x128xf32> -> vector<8x128xf32>
    %c0_3 = arith.constant 0 : index
    %c0_4 = arith.constant 0 : index
    %3 = vector.load %arg6[%c0_3, %c0_4] : memref<1x128xf32, #tpu.memory_space<vmem>>, vector<1x128xf32>
    %4 = vector.broadcast %3 : vector<1x128xf32> to vector<8x128xf32>
    %5 = arith.addf %2, %4 : vector<8x128xf32>
    %c0_5 = arith.constant 0 : index
    %c0_6 = arith.constant 0 : index
    %6 = vector.load %arg3[%c0_5, %c0_6] : memref<32x128xf32, #tpu.memory_space<vmem>>, vector<32x128xf32>
    %cst_7 = arith.constant dense<0.000000e+00> : vector<8x128xf32>
    %7 = tpu.matmul %0, %6, %cst_7 {dimension_numbers = #tpu.dot_dimension_numbers<[1], [0], [0], [1], [0, 0, 1, 1], [], []>} : vector<8x32xf32>, vector<32x128xf32>, vector<8x128xf32> -> vector<8x128xf32>
    %c0_8 = arith.constant 0 : index
    %c0_9 = arith.constant 0 : index
    %8 = vector.load %arg4[%c0_8, %c0_9] : memref<32x128xf32, #tpu.memory_space<vmem>>, vector<32x128xf32>
    %cst_10 = arith.constant dense<0.000000e+00> : vector<8x128xf32>
    %9 = tpu.matmul %0, %8, %cst_10 {dimension_numbers = #tpu.dot_dimension_numbers<[1], [0], [0], [1], [0, 0, 1, 1], [], []>} : vector<8x32xf32>, vector<32x128xf32>, vector<8x128xf32> -> vector<8x128xf32>
    %10 = arith.mulf %7, %9 : vector<8x128xf32>
    %c0_11 = arith.constant 0 : index
    %c0_12 = arith.constant 0 : index
    %11 = vector.load %arg5[%c0_11, %c0_12] : memref<128x128xf32, #tpu.memory_space<vmem>>, vector<128x128xf32>
    %cst_13 = arith.constant dense<0.000000e+00> : vector<8x128xf32>
    %12 = tpu.matmul %10, %11, %cst_13 {dimension_numbers = #tpu.dot_dimension_numbers<[1], [0], [0], [1], [0, 0, 1, 1], [], []>} : vector<8x128xf32>, vector<128x128xf32>, vector<8x128xf32> -> vector<8x128xf32>
    %13 = arith.addf %5, %12 : vector<8x128xf32>
    %c0_14 = arith.constant 0 : index
    %c0_15 = arith.constant 0 : index
    %14 = vector.load %arg7[%c0_14, %c0_15] : memref<8x128xf32, #tpu.memory_space<vmem>>, vector<8x128xf32>
    tpu.vector_store %arg7[%c0_14, %c0_15], %13 {strides = array<i32>} : memref<8x128xf32, #tpu.memory_space<vmem>>, vector<8x128xf32>,
    return
  }
  func.func @transform_0(%arg0: i32) -> (i32, i32) {
    %c0_i32 = arith.constant 0 : i32
    %c0_i32_0 = arith.constant 0 : i32
    return %arg0, %c0_i32 : i32, i32
  }
  func.func @transform_1(%arg0: i32) -> (i32, i32) {
    %c0_i32 = arith.constant 0 : i32
    %c0_i32_0 = arith.constant 0 : i32
    %c0_i32_1 = arith.constant 0 : i32
    return %c0_i32, %c0_i32_0 : i32, i32
  }
  func.func @transform_2(%arg0: i32) -> (i32, i32) {
    %c0_i32 = arith.constant 0 : i32
    %c0_i32_0 = arith.constant 0 : i32
    %c0_i32_1 = arith.constant 0 : i32
    return %c0_i32, %c0_i32_0 : i32, i32
  }
  func.func @transform_3(%arg0: i32) -> (i32, i32) {
    %c0_i32 = arith.constant 0 : i32
    %c0_i32_0 = arith.constant 0 : i32
    %c0_i32_1 = arith.constant 0 : i32
    return %c0_i32, %c0_i32_0 : i32, i32
  }
  func.func @transform_4(%arg0: i32) -> (i32, i32) {
    %c0_i32 = arith.constant 0 : i32
    %c0_i32_0 = arith.constant 0 : i32
    %c0_i32_1 = arith.constant 0 : i32
    return %c0_i32, %c0_i32_0 : i32, i32
  }
  func.func @transform_5(%arg0: i32) -> (i32, i32) {
    %c0_i32 = arith.constant 0 : i32
    %c0_i32_0 = arith.constant 0 : i32
    %c0_i32_1 = arith.constant 0 : i32
    return %c0_i32, %c0_i32_0 : i32, i32
  }
  func.func @transform_6(%arg0: i32) -> (i32, i32) {
    %c0_i32 = arith.constant 0 : i32
    %c0_i32_0 = arith.constant 0 : i32
    return %arg0, %c0_i32 : i32, i32
  }
}

</mosaic_0001>

<bundles_post_ra>
// kernel: tpu_custom_call.1
= control target key start
LH: loop header
LB: loop body
LE: loop exit
PB: predicated region body
PF: predicated region fallthrough
CT: control target
= control target key end

     0   :  { %s1503_s0 = inlined_call_operand.hbm [shape: f32[16,32], index: 0, kind: input, shape index: {}]   ;;  %s1504_s1 = inlined_call_operand.hbm [shape: f32[32,128], index: 1, kind: input, shape index: {}]   ;;  %s1505_s2 = inlined_call_operand.hbm [shape: f32[32,128], index: 2, kind: input, shape index: {}]   ;;  %s1506_s3 = inlined_call_operand.hbm [shape: f32[32,128], index: 3, kind: input, shape index: {}]   ;;  %s1507_s4 = inlined_call_operand.hbm [shape: f32[128,128], index: 4, kind: input, shape index: {}]   ;;  %s1508_s5 = inlined_call_operand.vmem [shape: f32[1,128], index: 5, kind: input, shape index: {}]   ;;  %s1509_s6 = inlined_call_operand.hbm [shape: f32[16,128], index: 6, kind: output, shape index: {}]  }
   0x1   :  { %1514 = sst [smem:[#allocation16_spill]] %s1504_s1 }
   0x2   :  { %11 = vsyncpa [#allocation3], 0 }
   0x3   :  { %13 = vsyncpa [#allocation3 + $0x1], 0 }
   0x4   :  { %14 = vsyncpa [#allocation6], 0 }
   0x5   :  { %15 = vsyncpa [#allocation9], 0 }
   0x6   :  { %16 = vsyncpa [#allocation4], 0 }
   0x7   :  { %18 = vsyncpa [#allocation4 + $0x1], 0  ;;  %s1236_s21 = smov 0   ;;  %s1238_s22 = smov 0  }
   0x8   :  { %s1240_s23 = smov 0   ;;  %s1242_s24 = smov 0  }
   0x9 LB: > { %s1191_s25 = smov [#allocation5]   ;;  %s1257_s27 = sadd.s32 4294967295, %s1189_s24   ;;  %s1189_s24 = sphi %s1242_s24, %s1535_s24   ;;  %s1185_s23 = sphi %s1240_s23, %s1534_s23   ;;  %s1181_s22 = sphi %s1238_s22, %s1533_s22   ;;  %s1177_s21 = sphi %s1236_s21, %s1532_s21  }
   0xa   : > { %s198_s26 = sshll.u32 %s1191_s25, 4  ;;  %p771_p0 = scmp.ge.s32.totalorder %s1189_s24, 1  ;;  %s199_s26 = int_to_ptr.vmem [resolvable:$true] %s198_s26 }
   0xb   : > { %p1510_p1 = scmp.eq.s32.totalorder %s1257_s27, 0  ;;  %p186_p2 = scmp.lt.s32.totalorder %s1189_s24, 3 }
   0xc   : > { %s1192_s29 = smov [#allocation8]   ;;  %s1193_s8 = smov [#allocation7]  }
   0xd   : > { %p1262_p3 = pnand %p771_p0, %p186_p2  ;;  %s224_s30 = sshll.u32 %s1192_s29, 4  ;;  %s1275_s30 = int_to_ptr.vmem [resolvable:$true] %s224_s30 }
   0xe   : > { %s211_s9 = sshll.u32 %s1193_s8, 4  ;;  %s996_s10 = scalar_lea.vmem %s199_s26, 512  ;;  %s1277_s9 = int_to_ptr.vmem [resolvable:$true] %s211_s9 }
   0xf   : > { %s1515_s28 = scalar_select %p1262_p3, 1, 0 }
  0x10   : > { %p914_p5 = pneg %p1262_p3  ;;  %p997_p8 = scmp.ne.s32.totalorder %s199_s26, %s996_s10 }
  0x11   : > { %p1004_p11 = scmp.lt.s32.totalorder %s199_s26, %s199_s26  ;;  %p1005_p12 = scmp.lt.s32.totalorder %s996_s10, %s996_s10 }
  0x12   : > { %p1271_p6 = pnand %p914_p5, %p1510_p1 }
  0x13   : > { %p1006_p13 = por %p1005_p12, %p1004_p11 }
  0x14   : > { %p987_p7 = pneg %p1271_p6 }
  0x16   : > { %p999_p9 = pnand %p997_p8, %p987_p7 }
  0x18   : > { %p1000_p10 = pneg %p999_p9 }
  0x1a   : > { %p1007_p0 = pnand %p1006_p13, %p1000_p10 }
  0x1c   : > { %1010 = shalt.err (!%p1007_p0)
}
  0x1d   : > { %s1194_s11 = smov 128   ;;  %s1195_s12 = smov 8  }
  0x1e   : > { %s1517_s1 = sld [smem:[#allocation16_spill]]  ;;  %s1022_s15 = scalar_lea.vmem %s1275_s30, 512 }
  0x1f   : > { %p1023_p2 = scmp.ne.s32.totalorder %s1275_s30, %s1022_s15  ;;  %p1030_p9 = scmp.lt.s32.totalorder %s1275_s30, %s1275_s30 }
  0x20   : > { %p1031_p10 = scmp.lt.s32.totalorder %s1022_s15, %s1022_s15 }
  0x21   : > { %p1025_p5 = pnand %p1023_p2, %p987_p7 }
  0x22   : > { %p1032_p11 = por %p1031_p10, %p1030_p9 }
  0x23   : > { %p1026_p8 = pneg %p1025_p5 }
  0x24   : > { %917 = dma.hbm_to_vmem [thread:$0]  (!%p1271_p6), %s1517_s1, 512, %s199_s26, [#allocation6], %s1194_s11, %s1194_s11, %s1195_s12  }
  0x25   : > { %p1033_p12 = pnand %p1032_p11, %p1026_p8 }
  0x27   : > { %1036 = shalt.err (!%p1033_p12)
}
  0x28   : > { %923 = dma.hbm_to_vmem [thread:$0]  (!%p1271_p6), %s1506_s3, 512, %s1275_s30, [#allocation9], %s1194_s11, %s1194_s11, %s1195_s12  }
  0x29   : > { %s1048_s18 = scalar_lea.vmem %s1277_s9, 512  ;;  %p1056_p5 = scmp.lt.s32.totalorder %s1277_s9, %s1277_s9 }
  0x2a   : > { %p1049_p13 = scmp.ne.s32.totalorder %s1277_s9, %s1048_s18  ;;  %p1057_p8 = scmp.lt.s32.totalorder %s1048_s18, %s1048_s18 }
  0x2c   : > { %p1051_p0 = pnand %p1049_p13, %p987_p7  ;;  %p1058_p9 = por %p1057_p8, %p1056_p5 }
  0x2e   : > { %p1052_p2 = pneg %p1051_p0 }
  0x30   : > { %p1059_p10 = pnand %p1058_p9, %p1052_p2 }
  0x32   : > { %1062 = shalt.err (!%p1059_p10)
}
  0x33   : > { %920 = dma.hbm_to_vmem [thread:$0]  (!%p1271_p6), %s1505_s2, 512, %s1277_s9, [#allocation6], %s1194_s11, %s1194_s11, %s1195_s12  }
  0x34   : > { %s1196_s25 = smov [#allocation10]  }
  0x35   : > { %s237_s26 = sshll.u32 %s1196_s25, 4  ;;  %s238_s26 = int_to_ptr.vmem [resolvable:$true] %s237_s26 }
  0x36   : > { %s1074_s29 = scalar_lea.vmem %s238_s26, 2048  ;;  %p1082_p0 = scmp.lt.s32.totalorder %s238_s26, %s238_s26 }
  0x37   : > { %p1075_p11 = scmp.ne.s32.totalorder %s238_s26, %s1074_s29  ;;  %p1083_p2 = scmp.lt.s32.totalorder %s1074_s29, %s1074_s29 }
  0x39   : > { %p1077_p12 = pnand %p1075_p11, %p987_p7  ;;  %p1084_p5 = por %p1083_p2, %p1082_p0 }
  0x3b   : > { %p1078_p13 = pneg %p1077_p12 }
  0x3d   : > { %p1085_p8 = pnand %p1084_p5, %p1078_p13 }
  0x3f   : > { %1088 = shalt.err (!%p1085_p8)
}
  0x40   : > { %926 = dma.hbm_to_vmem [thread:$0]  (!%p1271_p6), %s1507_s4, 2048, %s238_s26, [#allocation9], %s1194_s11, %s1194_s11, %s1195_s12  }
  0x41   : > { %s770_s7 = sadd.s32 4294967294, %s1189_s24   ;;  %s1337_s9 = sadd.s32 1, %s1189_s24  }
  0x42   : > { %s28_s10 = ssub.s32 %s1189_s24, %s1337_s9  ;;  %s31_s13 = sadd.s32 1, %s1185_s23 }
  0x43   : > { %p29_p7 = scmp.eq.s32.totalorder %s28_s10, 0  ;;  %p38_p9 = scmp.ne.s32.totalorder %s1185_s23, %s1181_s22 }
  0x44   : > { %p39_p10 = scmp.eq.s32.totalorder %s1189_s24, 0  ;;  %p44_p11 = scmp.ne.s32.totalorder %s1181_s22, %s1177_s21 }
  0x45   : > { %s1348_s14 = scalar_select %p29_p7, %s1185_s23, %s31_s13  }
  0x46   : > { %p1350_p12 = por %p39_p10, %p38_p9  ;;  %p1356_p6 = por %p1510_p1, %p44_p11 }
  0x47   : > { %p173_p13 = scmp.eq.s32.totalorder %s1257_s27, 1  ;;  %p179_p0 = scmp.eq.s32.totalorder %s770_s7, 1 }
  0x48   : > { %s1519_s11 = scalar_select %p1356_p6, 1, 0 }
  0x49   : > { %p939_p2 = scmp.lt.s32.totalorder %s1189_s24, 2  ;;  %s254_s12 = sand.u32 1, %s1185_s23  }
  0x4a   : > { %p1363_p5 = por %p173_p13, %p38_p9  ;;  %p1367_p8 = por %p179_p0, %p44_p11 }
  0x4b   : > { %s777_s18 = sshll.u32 %s254_s12, 3  ;;  %s778_s19 = sshll.u32 %s1189_s24, 7 }
  0x4c   : > { %s1520_s16 = scalar_select %p1363_p5, 1, 0 }
  0x4d   : > { %s1521_s17 = scalar_select %p1367_p8, 1, 0 }
  0x4e   : > { %s1375_s26 = scalar_lea.hbm %s1503_s0, %s778_s19  ;;  %s258_s29 = scalar_lea.vmem [#allocation2], %s777_s18 }
  0x4f   : > { %s265_s30 = sshll.u32 %s258_s29, 4  ;;  %p1379_p7 = pnand %p939_p2, %p1350_p12  ;;  %s266_s30 = int_to_ptr.vmem [resolvable:$true] %s265_s30 }
  0x50   : > { %s255_s7 = scalar_lea.sflag [#allocation3], %s254_s12  ;;  %s1089_s10 = scalar_lea.hbm %s1375_s26, 128 }
  0x51   : > { %p1090_p9 = scmp.ne.s32.totalorder %s1375_s26, %s1089_s10  ;;  %p1091_p10 = pneg %p1379_p7 }
  0x52   : > { %s1094_s20 = scalar_lea.hbm %s1503_s0, 256  ;;  %p1095_p0 = scmp.lt.s32.totalorder %s1375_s26, %s1503_s0 }
  0x53   : > { %p1092_p11 = pnand %p1091_p10, %p1090_p9  ;;  %p1096_p12 = scmp.lt.s32.totalorder %s1094_s20, %s1089_s10 }
  0x55   : > { %p1093_p13 = pneg %p1092_p11  ;;  %p1097_p2 = por %p1096_p12, %p1095_p0 }
  0x57   : > { %p1098_p4 = pnand %p1097_p2, %p1093_p13 }
  0x59   : > { %1101 = shalt.err (!%p1098_p4)
}
  0x5a   : > { %s1102_s15 = scalar_lea.vmem %s266_s30, 128  ;;  %s1197_s12 = smov [#allocation2]  }
  0x5b   : > { %p1103_p1 = scmp.ne.s32.totalorder %s266_s30, %s1102_s15  ;;  %s1107_s29 = sshll.u32 %s1197_s12, 4  ;;  %s1108_s29 = int_to_ptr.vmem [resolvable:$false] %s1107_s29 }
  0x5c   : > { %s1109_s1 = scalar_lea.vmem %s1108_s29, 256  ;;  %p1110_p9 = scmp.lt.s32.totalorder %s266_s30, %s1108_s29 }
  0x5d   : > { %p1105_p8 = pnand %p1103_p1, %p1091_p10  ;;  %p1111_p11 = scmp.lt.s32.totalorder %s1109_s1, %s1102_s15 }
  0x5f   : > { %p1106_p5 = pneg %p1105_p8  ;;  %p1112_p6 = por %p1111_p11, %p1110_p9 }
  0x61   : > { %p1113_p3 = pnand %p1112_p6, %p1106_p5 }
  0x63   : > { %1116 = shalt.err (!%p1113_p3)
}
  0x64   : > { %930 = dma.hbm_to_vmem [thread:$0]  (!%p1379_p7), %s1375_s26, 128, %s266_s30, %s255_s7  }
  0x65   : > { %p1523_p13 = scmp.ne.s32.totalorder %s1515_s28, 0 }
  0x66   : > { %s1400_s10 = sand.u32 (!%p1523_p13), 1, %s1181_s22   ;;  %p1524_p1 = scmp.ne.s32.totalorder (!%p1523_p13), %s1519_s11, 0 }
  0x67   : > { %274 = sbr.rel (%p1523_p13) target bundleno = 544 (0x220), region = 44  ;;  %s780_s13 = sshll.u32 (!%p1523_p13), %s1400_s10, 3 }
  0x68   : > { %s277_s19 = scalar_lea.sflag (!%p1523_p13), [#allocation3], %s1400_s10  ;;  %s280_s1 = scalar_lea.vmem (!%p1523_p13), [#allocation2], %s780_s13 }
  0x6c   : > { %1160 = dma.done.wait (%p1524_p1), %s277_s19, 128  }
  0x6d   : > { %1162 = vsyncadd (%p1524_p1), %s277_s19, 4294967168  ;;  %p1525_p3 = scmp.eq.s32.totalorder %s1257_s27, 0 }
  0x6f   : > { %1164 = dma.done.wait (%p1525_p3), [#allocation6], 1024   ;;  %p1526_p4 = pmov %p1525_p3 }
  0x70   : > { %p1527_p6 = pmov %p1525_p3 }
  0x71   : > { %1166 = vsyncadd (%p1526_p4), [#allocation6], 4294966272 }
  0x72   : > { %1168 = dma.done.wait (%p1527_p6), [#allocation9], 2560   ;;  %p1528_p5 = pmov %p1525_p3 }
  0x73   : > { %v1198_v0 = vmov 0.0   ;;  %vm1199_vm0 = vmmov 0   ;;  %v329_v1 = vld [vmem:[#allocation5 + $0x18] sm:$0xff]  ;;  %v328_v2 = vld [vmem:[#allocation5 + $0x10] sm:$0xff]  ;;  %v327_v3 = vld [vmem:[#allocation5 + $0x8] sm:$0xff]  ;;  %vm337_vm1 = vcmask 261120  }
  0x74   : > { %1170 = vsyncadd (%p1528_p5), [#allocation9], 4294964736  ;;  %826 = vmatprep.subr.mxu0 %v1198_v0  ;;  %834 = vmatprep.mubr.msk.f32.mxu0 %vm1199_vm0, %v1198_v0  ;;  %v326_v4 = vld [vmem:[#allocation5] sm:$0xff]  ;;  %v575_v5 = vld [vmem:[#allocation10 + $0x78] sm:$0xff]  ;;  %s791_s26 = sshll.u32 %s1257_s27, 7  ;;  %s324_s30 = scalar_lea.vmem [#allocation11], %s780_s13 }
  0x75   : > { %859 = vmatprep.subr.mxu1 %v1198_v0  ;;  %891 = vmatprep.mubr.msk.f32.mxu1 %vm1199_vm0, %v1198_v0  ;;  %v574_v6 = vld [vmem:[#allocation10 + $0x70] sm:$0xff]  ;;  %v414_v8 = vld [vmem:[#allocation7 + $0x18] sm:$0xff]  ;;  %v573_v10 = vld [vmem:[#allocation10 + $0x68] sm:$0xff]  ;;  %s662_s8 = sshll.u32 %s324_s30, 4  ;;  %s1466_s18 = scalar_lea.hbm %s1509_s6, %s791_s26  ;;  %s663_s8 = int_to_ptr.vmem [resolvable:$true] %s662_s8 }
  0x76   : > { %827 = vmatpush3.msra.mxu0 %v329_v1  ;;  %v325_v7 = vld [vmem:[%s280_s1] sm:$0xff]  ;;  %860 = vmatpush3.msra.mxu1 %v575_v5  ;;  %v412_v11 = vld [vmem:[#allocation7 + $0x8] sm:$0xff]  ;;  %v572_v12 = vld [vmem:[#allocation10 + $0x60] sm:$0xff]  ;;  %s649_s25 = scalar_lea.sflag [#allocation4], %s1400_s10  ;;  %s1117_s15 = scalar_lea.vmem %s663_s8, 128 }
  0x77   : > { %828 = vmatprep.subr.mxu0 %v1198_v0  ;;  %861 = vmatprep.subr.mxu1 %v1198_v0  ;;  %v413_v9 = vld [vmem:[#allocation7 + $0x10] sm:$0xff]  ;;  %v411_v13 = vld [vmem:[#allocation7] sm:$0xff]  ;;  %v571_v14 = vld [vmem:[#allocation10 + $0x58] sm:$0xff]  ;;  %p1118_p8 = scmp.ne.s32.totalorder %s663_s8, %s1117_s15  ;;  %p1529_p7 = scmp.ne.s32.totalorder %s1520_s16, 0 }
  0x78   : > { %829 = vmatpush3.msra.mxu0 %v328_v2  ;;  %862 = vmatpush3.msra.mxu1 %v574_v6  ;;  %v488_v15 = vld [vmem:[#allocation8 + $0x18] sm:$0xff]  ;;  %v487_v16 = vld [vmem:[#allocation8 + $0x10] sm:$0xff]  ;;  %v486_v18 = vld [vmem:[#allocation8 + $0x8] sm:$0xff]  ;;  %s1200_s27 = smov [#allocation11]  }
  0x79   : > { %830 = vmatprep.subr.mxu0 %v1198_v0  ;;  %863 = vmatprep.subr.mxu1 %v1198_v0  ;;  %v570_v17 = vld [vmem:[#allocation10 + $0x50] sm:$0xff]  ;;  %v485_v19 = vld [vmem:[#allocation8] sm:$0xff]  ;;  %v569_v20 = vld [vmem:[#allocation10 + $0x48] sm:$0xff]  ;;  %p1119_p10 = pnand %p1118_p8, %p1529_p7  ;;  %s1121_s12 = sshll.u32 %s1200_s27, 4  ;;  %s1122_s12 = int_to_ptr.vmem [resolvable:$false] %s1121_s12 }
  0x7a   : > { %831 = vmatpush3.msra.mxu0 %v327_v3  ;;  %864 = vmatpush3.msra.mxu1 %v573_v10  ;;  %v568_v21 = vld [vmem:[#allocation10 + $0x40] sm:$0xff]  ;;  %v567_v22 = vld [vmem:[#allocation10 + $0x38] sm:$0xff]  ;;  %v566_v23 = vld [vmem:[#allocation10 + $0x30] sm:$0xff]  ;;  %s1123_s29 = scalar_lea.vmem %s1122_s12, 256  ;;  %p1124_p12 = scmp.lt.s32.totalorder %s663_s8, %s1122_s12 }
  0x7b   : > { %832 = vmatprep.subr.mxu0 %v1198_v0  ;;  %865 = vmatprep.subr.mxu1 %v1198_v0  ;;  %v565_v24 = vld [vmem:[#allocation10 + $0x28] sm:$0xff]  ;;  %v564_v25 = vld [vmem:[#allocation10 + $0x20] sm:$0xff]  ;;  %v563_v26 = vld [vmem:[#allocation10 + $0x18] sm:$0xff]  ;;  %p1120_p0 = pneg %p1119_p10  ;;  %p1125_p2 = scmp.lt.s32.totalorder %s1123_s29, %s1117_s15 }
  0x7c   : > { %833 = vmatpush3.msra.mxu0 %v326_v4  ;;  %866 = vmatpush3.msra.mxu1 %v572_v12  ;;  %v562_v27 = vld [vmem:[#allocation10 + $0x10] sm:$0xff]  ;;  %v561_v28 = vld [vmem:[#allocation10 + $0x8] sm:$0xff]  ;;  %v560_v29 = vld [vmem:[#allocation10] sm:$0xff] }
  0x7d   : > { %835 = vmatmul.mubr.msk.f32.vlgmr.msra.gmra.mxu0 %vm337_vm1, %v325_v7  ;;  %837 = vmatprep.subr.mxu0 %v1198_v0  ;;  %v786_v37 = vld [vmem:[%s1508_s5] ss:$0 sm:$0xff]  ;;  %p1126_p9 = por %p1125_p2, %p1124_p12 }
  0x7e   : > { %838 = vmatpush3.msra.mxu0 %v414_v8  ;;  %845 = vmatprep.mubr.msk.f32.mxu0 %vm1199_vm0, %v1198_v0 }
  0x7f   : > { %839 = vmatprep.subr.mxu0 %v1198_v0  ;;  %867 = vmatprep.subr.mxu1 %v1198_v0  ;;  %p1127_p11 = pnand %p1126_p9, %p1120_p0 }
  0x80   : > { %840 = vmatpush3.msra.mxu0 %v413_v9  ;;  %868 = vmatpush3.msra.mxu1 %v571_v14 }
  0x81   : > { %841 = vmatprep.subr.mxu0 %v1198_v0  ;;  %869 = vmatprep.subr.mxu1 %v1198_v0 }
  0x82   : > { %842 = vmatpush3.msra.mxu0 %v412_v11  ;;  %870 = vmatpush3.msra.mxu1 %v570_v17 }
  0x83   : > { %843 = vmatprep.subr.mxu0 %v1198_v0  ;;  %871 = vmatprep.subr.mxu1 %v1198_v0 }
  0x84   : > { %844 = vmatpush3.msra.mxu0 %v411_v13  ;;  %872 = vmatpush3.msra.mxu1 %v569_v20 }
  0x85   : > { %846 = vmatmul.mubr.msk.f32.vlgmr.msra.gmra.mxu0 %vm337_vm1, %v325_v7  ;;  %848 = vmatprep.subr.mxu0 %v1198_v0 }
  0x86   : > { %849 = vmatpush3.msra.mxu0 %v488_v15  ;;  %856 = vmatprep.mubr.msk.f32.mxu0 %vm1199_vm0, %v1198_v0 }
  0x87   : > { %850 = vmatprep.subr.mxu0 %v1198_v0  ;;  %873 = vmatprep.subr.mxu1 %v1198_v0 }
  0x88   : > { %851 = vmatpush3.msra.mxu0 %v487_v16  ;;  %874 = vmatpush3.msra.mxu1 %v568_v21 }
  0x89   : > { %852 = vmatprep.subr.mxu0 %v1198_v0  ;;  %875 = vmatprep.subr.mxu1 %v1198_v0 }
  0x8a   : > { %853 = vmatpush3.msra.mxu0 %v486_v18  ;;  %876 = vmatpush3.msra.mxu1 %v567_v22 }
  0x8b   : > { %854 = vmatprep.subr.mxu0 %v1198_v0  ;;  %877 = vmatprep.subr.mxu1 %v1198_v0 }
  0x8c   : > { %855 = vmatpush3.msra.mxu0 %v485_v19  ;;  %878 = vmatpush3.msra.mxu1 %v566_v23 }
  0x8d   : > { %857 = vmatmul.mubr.msk.f32.vlgmr.msra.gmra.mxu0 %vm337_vm1, %v325_v7  ;;  %879 = vmatprep.subr.mxu1 %v1198_v0 }
  0x8e   : > { %880 = vmatpush3.msra.mxu1 %v565_v24 }
  0x8f   : > { %881 = vmatprep.subr.mxu1 %v1198_v0 }
  0x90   : > { %882 = vmatpush3.msra.mxu1 %v564_v25 }
  0x91   : > { %883 = vmatprep.subr.mxu1 %v1198_v0 }
  0x92   : > { %884 = vmatpush3.msra.mxu1 %v563_v26 }
  0x93   : > { %885 = vmatprep.subr.mxu1 %v1198_v0 }
  0x94   : > { %886 = vmatpush3.msra.mxu1 %v562_v27 }
  0x95   : > { %887 = vmatprep.subr.mxu1 %v1198_v0 }
  0x96   : > { %888 = vmatpush3.msra.mxu1 %v561_v28 }
  0x97   : > { %889 = vmatprep.subr.mxu1 %v1198_v0 }
  0x98   : > { %890 = vmatpush3.msra.mxu1 %v560_v29 }
 0x13d   : > { %v407_v30 = vpop.f32.mrf.mxu0 }
 0x13e   : > { %v408_v38 = vadd.f32 %v786_v37, %v407_v30 }
 0x13f   : > { %v836_v31 = vpop.f32.mrf.mxu0 }
 0x145   : > { %v481_v32 = vpop.f32.mrf.mxu0 }
 0x147   : > { %v847_v33 = vpop.f32.mrf.mxu0 }
 0x14d   : > { %v555_v34 = vpop.f32.mrf.mxu0 }
 0x14e   : > { %v559_v35 = vmul.f32 %v555_v34, %v481_v32 }
 0x14f   : > { %v858_v36 = vpop.f32.mrf.mxu0 }
 0x150   : > { %892 = vmatmul.mubr.f32.vlgmr.msra.gmra.mxu1 %v559_v35 }
 0x210   : > { %v642_v39 = vpop.f32.mrf.mxu1 }
 0x211   : > { %v646_v40 = vadd.f32 %v642_v39, %v408_v38 }
 0x212   : > { %v893_v41 = vpop.f32.mrf.mxu1 }
 0x213   : > { %647 = vst [vmem:[%s324_s30] sm:$0xff] %v646_v40 }
 0x214   : > { %1130 = shalt.err (!%p1127_p11)
}
 0x215   : > { %s1131_s13 = scalar_lea.hbm %s1466_s18, 128  ;;  %s1135_s1 = scalar_lea.hbm %s1509_s6, 256 }
 0x216   : > { %p1132_p13 = scmp.ne.s32.totalorder %s1466_s18, %s1131_s13  ;;  %p1136_p4 = scmp.lt.s32.totalorder %s1466_s18, %s1509_s6 }
 0x217   : > { %p1137_p6 = scmp.lt.s32.totalorder %s1135_s1, %s1131_s13 }
 0x218   : > { %p1133_p1 = pnand %p1132_p13, %p1529_p7 }
 0x219   : > { %p1138_p5 = por %p1137_p6, %p1136_p4 }
 0x21a   : > { %p1134_p3 = pneg %p1133_p1 }
 0x21c   : > { %p1139_p8 = pnand %p1138_p5, %p1134_p3 }
 0x21e   : > { %1142 = shalt.err (!%p1139_p8)
}
 0x21f   : > { %912 = dma.vmem_to_hbm [thread:$0]  (%p1529_p7), %s663_s8, 128, %s1466_s18, %s649_s25  }
 0x220 PF: > { %s674_s26 = sand.u32 1, %s1177_s21   ;;  %p1530_p10 = scmp.ne.s32.totalorder %s1521_s17, 0 }
 0x221   : > { %p1531_p0 = scmp.ge.s32.totalorder %s1189_s24, 2  ;;  %s675_s30 = scalar_lea.sflag [#allocation4], %s674_s26 }
 0x223   : > { %p932_p12 = pnand %p1531_p0, %p1530_p10 }
 0x225   : > { %p933_p2 = pneg %p932_p12 }
 0x227   : > { %1172 = dma.done.wait (%p933_p2), %s675_s30, 128  }
 0x228   : > { %1174 = vsyncadd (%p933_p2), %s675_s30, 4294967168  ;;  %p21_p9 = scmp.ge.s32.totalorder %s1337_s9, 4   ;;  %s1532_s21 = smov %s1181_s22 }
 0x229   : > { %s1533_s22 = smov %s1185_s23  ;;  %s1534_s23 = smov %s1348_s14 }
 0x22a   : > { %s1535_s24 = smov %s1337_s9  ;;  %23 = sbr.rel (!%p21_p9) target bundleno = 9 (0x9), region = 105 }
 0x22f   :  { %680 = vsyncpa [#allocation3], 1 }
 0x230   :  { %682 = vsyncpa [#allocation3 + $0x1], 1 }
 0x231   :  { %683 = vsyncpa [#allocation6], 1 }
 0x232   :  { %684 = vsyncpa [#allocation9], 1 }
 0x233   :  { %685 = vsyncpa [#allocation4], 1 }
 0x234   :  { %687 = vsyncpa [#allocation4 + $0x1], 1 }

</bundles_post_ra>
